<compile_context>
chip_gen: v7x
topology: tpu7x:2x2x1
jax: 0.10.0
libtpu: 0.0.40
codegen_flags: <defaults>
</compile_context>

<pallas_src>
import functools

import jax
import jax.numpy as jnp
from jax.experimental import pallas as pl
from jax.experimental.pallas import tpu as pltpu


# -----------------------------------------------------------------------------
# Kernels
# -----------------------------------------------------------------------------
def _nsa_attn_kernel(x_ref, w_ref, b_ref, bones_ref, csum_ref, o_ref, *,
                     le, lbs, nh, out_pad):
    """All num_heads BlockwiseSparseAttention layers fused, one row tile.

    The fused qkv projection uses a (head, layer, j) column order so the per-h2
    v replication below is a single contiguous lane slice + lane concat.
    """
    x = x_ref[...].astype(jnp.bfloat16)                              # [T, E]
    # Fused q/k/v projection for every layer: [T, E] @ [E, 3*L*E] on the MXU
    # (bf16 operands, f32 accumulation), bias added in f32.
    qkv = jnp.dot(x, w_ref[...], preferred_element_type=jnp.float32) + b_ref[...]
    q = qkv[:, :le]                                                  # [T, L*E]
    k = qkv[:, le:2 * le]
    v = qkv[:, 2 * le:]

    # Block-wise softmax over each block_size lane group.  Subtracting the
    # row-global max is exact (softmax is shift-invariant within a block); the
    # per-block denominator is broadcast via a block-diagonal-ones matmul and
    # clamped so underflowed blocks cannot produce inf/NaN through the
    # approximate (EUP) reciprocal.
    k_max = jnp.max(k, axis=-1, keepdims=True)                       # [T, 1]
    k_exp = jnp.exp(k - k_max)                                       # [T, L*E]
    denom = jnp.dot(k_exp.astype(jnp.bfloat16), bones_ref[...],
                    preferred_element_type=jnp.float32)              # [T, L*E]
    denom = jnp.maximum(denom, 1e-30)
    scores = q * (k_exp * pl.reciprocal(denom, approx=True))         # [T, L*E]

    # Head-vs-head contraction:
    #   out[t, l, h1, h2] = sum_j scores[t, l, h1, j] * v[t, l, h2, j]
    # v replication is pure in-register lane work (slice + concat); only the
    # small per-h2 block-sum/scatter matmul uses the MXU.
    acc = jnp.zeros((x.shape[0], out_pad), jnp.float32)
    for h2 in range(nh):
        v_rep = jnp.concatenate([v[:, h2 * lbs:(h2 + 1) * lbs]] * nh, axis=1)
        prod = (scores * v_rep).astype(jnp.bfloat16)                 # [T, L*E]
        acc = acc + jnp.dot(prod, csum_ref[:, h2 * out_pad:(h2 + 1) * out_pad],
                            preferred_element_type=jnp.float32)
    o_ref[...] = acc.astype(o_ref.dtype)                             # [T, OUT_PAD]


def _proj_kernel(x_ref, w_ref, b_ref, o_ref):
    o_ref[...] = (jnp.dot(x_ref[...].astype(jnp.bfloat16), w_ref[...],
                          preferred_element_type=jnp.float32)
                  + b_ref[...]).astype(o_ref.dtype)


# -----------------------------------------------------------------------------
# Structured constants / helpers
# -----------------------------------------------------------------------------
def _round_up(n, m):
    return ((n + m - 1) // m) * m


def _constant_matrices(num_heads, block_size, num_layers, out_pad):
    """bones: block-diagonal ones broadcasting the per-block softmax sum.
    csum:  H concatenated 0/1 matrices; csum_h2[h1*L*Bs + l*Bs + j,
           l*H*H + h1*H + h2] = 1 (block-sum over j + scatter into the padded,
           lane-dense output layout)."""
    H, Bs, L = num_heads, block_size, num_layers
    HH, LE, LBS = H * H, L * H * Bs, L * Bs
    r = jnp.arange(LE)
    bones = ((r[:, None] // Bs) == (r[None, :] // Bs)).astype(jnp.bfloat16)
    h1 = r // LBS
    l = (r // Bs) % L
    cols = jnp.arange(out_pad)
    csum = jnp.concatenate(
        [(cols[None, :] == (l * HH + h1 * H + h2)[:, None]).astype(jnp.bfloat16)
         for h2 in range(H)], axis=1)                                # [LE, H*OUT_PAD]
    return bones, csum


def _pick_tile(n_rows, want):
    t = min(want, n_rows)
    if n_rows >= 16:          # keep grid length >= 2 so both v7x TCs are fed
        t = min(t, n_rows // 2)
    return max(8, (t // 8) * 8)


def _resident(arr):
    nd = arr.ndim
    return pl.BlockSpec(arr.shape, lambda i, _nd=nd: (0,) * _nd)


# -----------------------------------------------------------------------------
# Wrapper (full NativeSparseAttention forward)
# -----------------------------------------------------------------------------
def native_sparse_attention(x, params, num_heads, block_size, *, row_tile=512):
    S, B, E = x.shape
    H, Bs, L = num_heads, block_size, num_heads      # the module builds H layers
    assert E == H * Bs, "embed_dim must equal num_heads * block_size"
    HH, LE, LBS = H * H, L * E, L * Bs
    SB = S * B
    out_pad = max(128, _round_up(L * HH, 128))       # lane-dense attn output
    ep = max(128, _round_up(E, 128))                 # lane-dense proj output
    x2d = x.reshape(SB, E)

    # Fold all layers' q/k/v projections into one [E, 3*L*E] bf16 weight with
    # (head, layer, j) column order; biases stay f32 (added post-matmul).
    def fuse(wname, bname):
        w = jnp.stack([lp[wname] for lp in params["layers"]], axis=0)   # [L,E,E]
        w = w.reshape(L, E, H, Bs).transpose(1, 2, 0, 3).reshape(E, LE)
        b = jnp.stack([lp[bname] for lp in params["layers"]], axis=0)   # [L,1,E]
        b = b.reshape(L, H, Bs).transpose(1, 0, 2).reshape(1, LE)
        return w, b

    wq, bq = fuse("wq_t", "bq")
    wk, bk = fuse("wk_t", "bk")
    wv, bv = fuse("wv_t", "bv")
    w_all = jnp.concatenate([wq, wk, wv], axis=1).astype(jnp.bfloat16)  # [E,3LE]
    b_all = jnp.concatenate([bq, bk, bv], axis=1)                       # [1,3LE] f32
    bones, csum = _constant_matrices(H, Bs, L, out_pad)

    # NOTE: the PyTorch buffer mask is all-ones (and only broadcastable when
    # batch == num_heads * (seq_len // block_size)), so the mask multiply is an
    # identity and is dropped entirely (saves an x-sized HBM read per layer).

    tile = _pick_tile(SB, row_tile)
    grid = (pl.cdiv(SB, tile),)
    # 48 MiB scoped VMEM: above the v5e/v6e scoped defaults (16/32 MiB) and
    # inside v7x's 64 MiB physical budget; v6e could go higher still.
    cparams = pltpu.CompilerParams(dimension_semantics=("parallel",),
                                   vmem_limit_bytes=48 * 1024 * 1024)
    cost = pl.CostEstimate(
        flops=2 * SB * (E * 3 * LE + LE * LE + H * LE * out_pad),
        transcendentals=SB * LE,
        bytes_accessed=(4 * SB * E + 2 * SB * out_pad
                        + 2 * (E * 3 * LE + LE * LE + LE * H * out_pad)
                        + 4 * 3 * LE))

    attn_pad = pl.pallas_call(
        functools.partial(_nsa_attn_kernel, le=LE, lbs=LBS, nh=H, out_pad=out_pad),
        out_shape=jax.ShapeDtypeStruct((SB, out_pad), jnp.bfloat16),
        grid=grid,
        in_specs=[pl.BlockSpec((tile, E), lambda i: (i, 0)),
                  _resident(w_all), _resident(b_all),
                  _resident(bones), _resident(csum)],
        out_specs=pl.BlockSpec((tile, out_pad), lambda i: (i, 0)),
        compiler_params=cparams,
        cost_estimate=cost,
    )(x2d, w_all, b_all, bones, csum)
    attn = attn_pad[:, :L * HH]                       # drop lane padding

    # Replicate torch: per-layer [S,B,H,H].view(-1,B,E) then cat(dim=-1);
    # tiny XLA reshape/transpose on the (bf16) intermediate, outside the kernel.
    assert (SB * HH) % E == 0, "seq_len*num_heads must be divisible by block_size"
    KB = (SB * HH) // E
    per_layer = attn.reshape(SB, L, HH).transpose(1, 0, 2).reshape(L, KB, E)
    cat2d = jnp.transpose(per_layer, (1, 0, 2)).reshape(KB, L * E)

    # TODO(synk): the original proj is nn.Linear(embed_dim, embed_dim), which
    # cannot consume the concatenated [..., embed_dim*num_heads] tensor (shape
    # error in PyTorch); implemented as Linear(embed_dim*num_heads, embed_dim).
    wproj = jnp.zeros((L * E, ep), jnp.float32).at[:, :E].set(params["wproj_t"])
    wproj_bf = wproj.astype(jnp.bfloat16)
    bproj = jnp.zeros((1, ep), jnp.float32).at[:, :E].set(params["bproj"])
    tile_p = _pick_tile(KB, row_tile)
    out2d_pad = pl.pallas_call(
        _proj_kernel,
        out_shape=jax.ShapeDtypeStruct((KB, ep), jnp.float32),
        grid=(pl.cdiv(KB, tile_p),),
        in_specs=[pl.BlockSpec((tile_p, L * E), lambda i: (i, 0)),
                  _resident(wproj_bf), _resident(bproj)],
        out_specs=pl.BlockSpec((tile_p, ep), lambda i: (i, 0)),
        compiler_params=cparams,
    )(cat2d, wproj_bf, bproj)
    out2d = out2d_pad[:, :E]

    # TODO(synk): the reference forward calls self.dropout, which is never
    # defined on NativeSparseAttention (AttributeError in PyTorch); dropout is
    # identity at inference, so it is omitted here.
    return out2d.reshape(KB // B, B, E)


# -----------------------------------------------------------------------------
# Parameter init (deterministic, PyTorch nn.Linear-style uniform)
# -----------------------------------------------------------------------------
def init_params(key, embed_dim, num_heads):
    def linear(k, fan_in, fan_out):
        kw, kb = jax.random.split(k)
        bound = 1.0 / (fan_in ** 0.5)
        w = jax.random.uniform(kw, (fan_out, fan_in), jnp.float32, -bound, bound)
        b = jax.random.uniform(kb, (1, fan_out), jnp.float32, -bound, bound)
        return w.T, b  # store W^T so kernels compute x @ W^T + b

    keys = jax.random.split(key, num_heads + 1)
    layers = []
    for lk in keys[:num_heads]:
        kq, kk, kv = jax.random.split(lk, 3)
        wq_t, bq = linear(kq, embed_dim, embed_dim)
        wk_t, bk = linear(kk, embed_dim, embed_dim)
        wv_t, bv = linear(kv, embed_dim, embed_dim)
        layers.append(dict(wq_t=wq_t, bq=bq, wk_t=wk_t, bk=bk, wv_t=wv_t, bv=bv))
    wproj_t, bproj = linear(keys[-1], embed_dim * num_heads, embed_dim)
    return dict(layers=layers, wproj_t=wproj_t, bproj=bproj)


# -----------------------------------------------------------------------------
# Pure-JAX reference (correctness check, f32 end-to-end)
# -----------------------------------------------------------------------------
def reference(x, params, num_heads, block_size):
    S, B, E = x.shape
    H, Bs = num_heads, block_size
    SB = S * B
    x2d = x.reshape(SB, E)
    outs = []
    for lp in params["layers"]:
        q = (x2d @ lp["wq_t"] + lp["bq"]).reshape(SB, H, Bs)
        k = (x2d @ lp["wk_t"] + lp["bk"]).reshape(SB, H, Bs)
        v = (x2d @ lp["wv_t"] + lp["bv"]).reshape(SB, H, Bs)
        scores = q * jax.nn.softmax(k, axis=-1)          # mask is all-ones
        out = jnp.einsum("thx,tkx->thk", scores, v).reshape(-1, E)   # [KB, E]
        outs.append(out)
    cat = jnp.concatenate(outs, axis=-1)                 # [KB, L*E]
    out2d = cat @ params["wproj_t"] + params["bproj"]
    return out2d.reshape(out2d.shape[0] // B, B, E)


# -----------------------------------------------------------------------------
if __name__ == "__main__":
    embed_dim, num_heads, block_size = 32, 4, 8   # embed_dim == num_heads*block_size
    seq_len = 16
    batch = num_heads * (seq_len // block_size)   # required by the torch mask broadcast

    key = jax.random.PRNGKey(0)
    kx, kp = jax.random.split(key)
    x = jax.random.normal(kx, (seq_len, batch, embed_dim), jnp.float32)
    params = init_params(kp, embed_dim, num_heads)

    out = native_sparse_attention(x, params, num_heads, block_size)
    out = jax.block_until_ready(out)

    ref = reference(x, params, num_heads, block_size)
    assert out.shape == ref.shape
    # tolerance loosened for bf16 matmul operands + approx softmax reciprocal
    max_err = float(jnp.max(jnp.abs(out - ref)))
    assert jnp.allclose(out, ref, atol=2e-2, rtol=2e-2), (
        f"mismatch vs reference (max abs err {max_err})")
    print("KERNEL_OK")
</pallas_src>

<mosaic_0001>
module attributes {stable_mosaic.version = 11 : i64} {
  func.func @_nsa_attn_kernel(%arg0: i32, %arg1: memref<64x32xf32, #tpu.memory_space<vmem>>, %arg2: memref<32x384xbf16, #tpu.memory_space<vmem>>, %arg3: memref<1x384xf32, #tpu.memory_space<vmem>>, %arg4: memref<128x128xbf16, #tpu.memory_space<vmem>>, %arg5: memref<128x512xbf16, #tpu.memory_space<vmem>>, %arg6: memref<64x128xbf16, #tpu.memory_space<vmem>>) attributes {dimension_semantics = [#tpu.dimension_semantics<parallel>], iteration_bounds = array<i64: 2>, scalar_prefetch = 0 : i64, scratch_operands = 0 : i64, tpu.core_type = #tpu.core_type<tc>, window_params = [{transform_indices = @transform_0, window_bounds = array<i64: 64, 32>}, {pipeline_mode = #tpu.pipeline_mode<synchronous>, transform_indices = @transform_1, window_bounds = array<i64: 32, 384>}, {pipeline_mode = #tpu.pipeline_mode<synchronous>, transform_indices = @transform_2, window_bounds = array<i64: 1, 384>}, {pipeline_mode = #tpu.pipeline_mode<synchronous>, transform_indices = @transform_3, window_bounds = array<i64: 128, 128>}, {pipeline_mode = #tpu.pipeline_mode<synchronous>, transform_indices = @transform_4, window_bounds = array<i64: 128, 512>}, {transform_indices = @transform_5, window_bounds = array<i64: 64, 128>}]} {
    %c0 = arith.constant 0 : index
    %c0_0 = arith.constant 0 : index
    %0 = vector.load %arg1[%c0, %c0_0] : memref<64x32xf32, #tpu.memory_space<vmem>>, vector<64x32xf32>
    %1 = arith.truncf %0 : vector<64x32xf32> to vector<64x32xbf16>
    %c0_1 = arith.constant 0 : index
    %c0_2 = arith.constant 0 : index
    %2 = vector.load %arg2[%c0_1, %c0_2] : memref<32x384xbf16, #tpu.memory_space<vmem>>, vector<32x384xbf16>
    %cst = arith.constant dense<0.000000e+00> : vector<64x384xf32>
    %3 = tpu.matmul %1, %2, %cst {dimension_numbers = #tpu.dot_dimension_numbers<[1], [0], [0], [1], [0, 0, 1, 1], [], []>} : vector<64x32xbf16>, vector<32x384xbf16>, vector<64x384xf32> -> vector<64x384xf32>
    %c0_3 = arith.constant 0 : index
    %c0_4 = arith.constant 0 : index
    %4 = vector.load %arg3[%c0_3, %c0_4] : memref<1x384xf32, #tpu.memory_space<vmem>>, vector<1x384xf32>
    %5 = vector.broadcast %4 : vector<1x384xf32> to vector<64x384xf32>
    %6 = arith.addf %3, %5 : vector<64x384xf32>
    %7 = vector.extract_strided_slice %6 {offsets = [0, 0], sizes = [64, 128], strides = [1, 1]} : vector<64x384xf32> to vector<64x128xf32>
    %8 = vector.extract_strided_slice %6 {offsets = [0, 128], sizes = [64, 128], strides = [1, 1]} : vector<64x384xf32> to vector<64x128xf32>
    %9 = vector.extract_strided_slice %6 {offsets = [0, 256], sizes = [64, 128], strides = [1, 1]} : vector<64x384xf32> to vector<64x128xf32>
    %cst_5 = arith.constant dense<0xFF800000> : vector<64xf32>
    %10 = vector.multi_reduction <maximumf>, %8, %cst_5 [1] : vector<64x128xf32> to vector<64xf32>
    %11 = vector.shape_cast %10 : vector<64xf32> to vector<64x1xf32>
    %12 = vector.broadcast %11 : vector<64x1xf32> to vector<64x128xf32>
    %13 = arith.subf %8, %12 : vector<64x128xf32>
    %14 = math.exp %13 : vector<64x128xf32>
    %15 = arith.truncf %14 : vector<64x128xf32> to vector<64x128xbf16>
    %c0_6 = arith.constant 0 : index
    %c0_7 = arith.constant 0 : index
    %16 = vector.load %arg4[%c0_6, %c0_7] : memref<128x128xbf16, #tpu.memory_space<vmem>>, vector<128x128xbf16>
    %cst_8 = arith.constant dense<0.000000e+00> : vector<64x128xf32>
    %17 = tpu.matmul %15, %16, %cst_8 {dimension_numbers = #tpu.dot_dimension_numbers<[1], [0], [0], [1], [0, 0, 1, 1], [], []>} : vector<64x128xbf16>, vector<128x128xbf16>, vector<64x128xf32> -> vector<64x128xf32>
    %cst_9 = arith.constant 1.000000e-30 : f32
    %18 = vector.broadcast %cst_9 : f32 to vector<64x128xf32>
    %19 = arith.maximumf %17, %18 : vector<64x128xf32>
    %20 = tpu.reciprocal %19 {approx = true} : vector<64x128xf32> -> vector<64x128xf32>
    %21 = arith.mulf %14, %20 : vector<64x128xf32>
    %22 = arith.mulf %7, %21 : vector<64x128xf32>
    %cst_10 = arith.constant 0.000000e+00 : f32
    %23 = vector.broadcast %cst_10 : f32 to vector<64x128xf32>
    %24 = vector.extract_strided_slice %9 {offsets = [0, 0], sizes = [64, 32], strides = [1, 1]} : vector<64x128xf32> to vector<64x32xf32>
    %25 = tpu.concatenate %24, %24, %24, %24 in 1 : vector<64x32xf32>, vector<64x32xf32>, vector<64x32xf32>, vector<64x32xf32> -> vector<64x128xf32>
    %26 = arith.mulf %22, %25 : vector<64x128xf32>
    %27 = arith.truncf %26 : vector<64x128xf32> to vector<64x128xbf16>
    %c0_11 = arith.constant 0 : index
    %c0_12 = arith.constant 0 : index
    %28 = vector.load %arg5[%c0_11, %c0_12] : memref<128x512xbf16, #tpu.memory_space<vmem>>, vector<128x128xbf16>
    %cst_13 = arith.constant dense<0.000000e+00> : vector<64x128xf32>
    %29 = tpu.matmul %27, %28, %cst_13 {dimension_numbers = #tpu.dot_dimension_numbers<[1], [0], [0], [1], [0, 0, 1, 1], [], []>} : vector<64x128xbf16>, vector<128x128xbf16>, vector<64x128xf32> -> vector<64x128xf32>
    %30 = arith.addf %23, %29 : vector<64x128xf32>
    %31 = vector.extract_strided_slice %9 {offsets = [0, 32], sizes = [64, 32], strides = [1, 1]} : vector<64x128xf32> to vector<64x32xf32>
    %32 = tpu.concatenate %31, %31, %31, %31 in 1 : vector<64x32xf32>, vector<64x32xf32>, vector<64x32xf32>, vector<64x32xf32> -> vector<64x128xf32>
    %33 = arith.mulf %22, %32 : vector<64x128xf32>
    %34 = arith.truncf %33 : vector<64x128xf32> to vector<64x128xbf16>
    %c0_14 = arith.constant 0 : index
    %c128 = arith.constant 128 : index
    %35 = vector.load %arg5[%c0_14, %c128] : memref<128x512xbf16, #tpu.memory_space<vmem>>, vector<128x128xbf16>
    %cst_15 = arith.constant dense<0.000000e+00> : vector<64x128xf32>
    %36 = tpu.matmul %34, %35, %cst_15 {dimension_numbers = #tpu.dot_dimension_numbers<[1], [0], [0], [1], [0, 0, 1, 1], [], []>} : vector<64x128xbf16>, vector<128x128xbf16>, vector<64x128xf32> -> vector<64x128xf32>
    %37 = arith.addf %30, %36 : vector<64x128xf32>
    %38 = vector.extract_strided_slice %9 {offsets = [0, 64], sizes = [64, 32], strides = [1, 1]} : vector<64x128xf32> to vector<64x32xf32>
    %39 = tpu.concatenate %38, %38, %38, %38 in 1 : vector<64x32xf32>, vector<64x32xf32>, vector<64x32xf32>, vector<64x32xf32> -> vector<64x128xf32>
    %40 = arith.mulf %22, %39 : vector<64x128xf32>
    %41 = arith.truncf %40 : vector<64x128xf32> to vector<64x128xbf16>
    %c0_16 = arith.constant 0 : index
    %c256 = arith.constant 256 : index
    %42 = vector.load %arg5[%c0_16, %c256] : memref<128x512xbf16, #tpu.memory_space<vmem>>, vector<128x128xbf16>
    %cst_17 = arith.constant dense<0.000000e+00> : vector<64x128xf32>
    %43 = tpu.matmul %41, %42, %cst_17 {dimension_numbers = #tpu.dot_dimension_numbers<[1], [0], [0], [1], [0, 0, 1, 1], [], []>} : vector<64x128xbf16>, vector<128x128xbf16>, vector<64x128xf32> -> vector<64x128xf32>
    %44 = arith.addf %37, %43 : vector<64x128xf32>
    %45 = vector.extract_strided_slice %9 {offsets = [0, 96], sizes = [64, 32], strides = [1, 1]} : vector<64x128xf32> to vector<64x32xf32>
    %46 = tpu.concatenate %45, %45, %45, %45 in 1 : vector<64x32xf32>, vector<64x32xf32>, vector<64x32xf32>, vector<64x32xf32> -> vector<64x128xf32>
    %47 = arith.mulf %22, %46 : vector<64x128xf32>
    %48 = arith.truncf %47 : vector<64x128xf32> to vector<64x128xbf16>
    %c0_18 = arith.constant 0 : index
    %c384 = arith.constant 384 : index
    %49 = vector.load %arg5[%c0_18, %c384] : memref<128x512xbf16, #tpu.memory_space<vmem>>, vector<128x128xbf16>
    %cst_19 = arith.constant dense<0.000000e+00> : vector<64x128xf32>
    %50 = tpu.matmul %48, %49, %cst_19 {dimension_numbers = #tpu.dot_dimension_numbers<[1], [0], [0], [1], [0, 0, 1, 1], [], []>} : vector<64x128xbf16>, vector<128x128xbf16>, vector<64x128xf32> -> vector<64x128xf32>
    %51 = arith.addf %44, %50 : vector<64x128xf32>
    %52 = arith.truncf %51 : vector<64x128xf32> to vector<64x128xbf16>
    %c0_20 = arith.constant 0 : index
    %c0_21 = arith.constant 0 : index
    %53 = vector.load %arg6[%c0_20, %c0_21] : memref<64x128xbf16, #tpu.memory_space<vmem>>, vector<64x128xbf16>
    tpu.vector_store %arg6[%c0_20, %c0_21], %52 {strides = array<i32>} : memref<64x128xbf16, #tpu.memory_space<vmem>>, vector<64x128xbf16>,
    return
  }
  func.func @transform_0(%arg0: i32) -> (i32, i32) {
    %c0_i32 = arith.constant 0 : i32
    %c0_i32_0 = arith.constant 0 : i32
    return %arg0, %c0_i32 : i32, i32
  }
  func.func @transform_1(%arg0: i32) -> (i32, i32) {
    %c0_i32 = arith.constant 0 : i32
    %c0_i32_0 = arith.constant 0 : i32
    %c0_i32_1 = arith.constant 0 : i32
    return %c0_i32, %c0_i32_0 : i32, i32
  }
  func.func @transform_2(%arg0: i32) -> (i32, i32) {
    %c0_i32 = arith.constant 0 : i32
    %c0_i32_0 = arith.constant 0 : i32
    %c0_i32_1 = arith.constant 0 : i32
    return %c0_i32, %c0_i32_0 : i32, i32
  }
  func.func @transform_3(%arg0: i32) -> (i32, i32) {
    %c0_i32 = arith.constant 0 : i32
    %c0_i32_0 = arith.constant 0 : i32
    %c0_i32_1 = arith.constant 0 : i32
    return %c0_i32, %c0_i32_0 : i32, i32
  }
  func.func @transform_4(%arg0: i32) -> (i32, i32) {
    %c0_i32 = arith.constant 0 : i32
    %c0_i32_0 = arith.constant 0 : i32
    %c0_i32_1 = arith.constant 0 : i32
    return %c0_i32, %c0_i32_0 : i32, i32
  }
  func.func @transform_5(%arg0: i32) -> (i32, i32) {
    %c0_i32 = arith.constant 0 : i32
    %c0_i32_0 = arith.constant 0 : i32
    return %arg0, %c0_i32 : i32, i32
  }
}

</mosaic_0001>

<bundles_post_ra>
// kernel: tpu_custom_call.1
= control target key start
LH: loop header
LB: loop body
LE: loop exit
PB: predicated region body
PF: predicated region fallthrough
CT: control target
= control target key end

     0   :  { %10 = vsyncpa [#allocation3], 0  ;;  %s2942_s0 = inlined_call_operand.vmem [shape: f32[128,32], index: 0, kind: input, shape index: {}]   ;;  %s2943_s1 = inlined_call_operand.vmem [shape: bf16[32,384], index: 1, kind: input, shape index: {}]   ;;  %s2944_s2 = inlined_call_operand.vmem [shape: f32[1,384], index: 2, kind: input, shape index: {}]   ;;  %s2945_s3 = inlined_call_operand.vmem [shape: bf16[128,128], index: 3, kind: input, shape index: {}]   ;;  %s2946_s4 = inlined_call_operand.hbm [shape: bf16[128,512], index: 4, kind: input, shape index: {}]   ;;  %s2947_s5 = inlined_call_operand.hbm [shape: bf16[128,128], index: 5, kind: output, shape index: {}]  }
   0x1   :  { %11 = vsyncpa [#allocation4], 0 }
   0x2   :  { %13 = vsyncpa [#allocation4 + $0x1], 0  ;;  %s2171_s18 = smov 0   ;;  %s2173_s19 = smov 0  }
   0x3   :  { %s2175_s20 = smov 0   ;;  %s2177_s21 = smov 0  }
   0x4 LB: > { %s2192_s22 = sadd.s32 4294967295, %s2130_s21   ;;  %s1553_s23 = sadd.s32 4294967294, %s2130_s21   ;;  %s2130_s21 = sphi %s2177_s21, %s2984_s21   ;;  %s2126_s20 = sphi %s2175_s20, %s2983_s20   ;;  %s2122_s19 = sphi %s2173_s19, %s2982_s19   ;;  %s2118_s18 = sphi %s2171_s18, %s2981_s18  }
   0x5   : > { %s2196_s24 = sadd.s32 1, %s2130_s21   ;;  %s136_s25 = sadd.s32 1, %s2126_s20 }
   0x6   : > { %s133_s26 = ssub.s32 %s2130_s21, %s2196_s24  ;;  %p146_p0 = scmp.ne.s32.totalorder %s2126_s20, %s2122_s19 }
   0x7   : > { %p134_p1 = scmp.eq.s32.totalorder %s133_s26, 0  ;;  %p147_p2 = scmp.eq.s32.totalorder %s2192_s22, 1 }
   0x8   : > { %p152_p3 = scmp.ne.s32.totalorder %s2122_s19, %s2118_s18  ;;  %p153_p4 = scmp.eq.s32.totalorder %s1553_s23, 1 }
   0x9   : > { %s2207_s27 = scalar_select %p134_p1, %s2126_s20, %s136_s25  }
   0xa   : > { %p2209_p5 = por %p147_p2, %p146_p0  ;;  %p2213_p6 = por %p153_p4, %p152_p3 }
   0xb   : > { %p1554_p7 = scmp.ge.s32.totalorder %s2130_s21, 1  ;;  %p160_p8 = scmp.lt.s32.totalorder %s2130_s21, 3 }
   0xc   : > { %s2952_s28 = scalar_select %p2209_p5, 1, 0 }
   0xd   : > { %s2953_s29 = scalar_select %p2213_p6, 1, 0 }
   0xe   : > { %p2948_p9 = scmp.eq.s32.totalorder %s2192_s22, 0  ;;  %p2220_p10 = pnand %p1554_p7, %p160_p8 }
   0xf   : > { %s2132_s6 = smov [#allocation2]   ;;  %s2036_s11 = scalar_lea.hbm %s2946_s4, 4096 }
  0x10   : > { %s2954_s30 = scalar_select %p2220_p10, 1, 0 }
  0x11   : > { %s181_s7 = sshll.u32 %s2132_s6, 4  ;;  %p1905_p11 = pneg %p2220_p10  ;;  %s182_s7 = int_to_ptr.vmem [resolvable:$true] %s181_s7 }
  0x12   : > { %p2037_p13 = scmp.ne.s32.totalorder %s2946_s4, %s2036_s11  ;;  %p2043_p3 = scmp.lt.u32.totalorder %s2036_s11, %s2946_s4 }
  0x13   : > { %p2228_p12 = pnand %p2948_p9, %p1905_p11 }
  0x15   : > { %p2038_p0 = pneg %p2228_p12 }
  0x17   : > { %p2039_p1 = pnand %p2038_p0, %p2037_p13 }
  0x19   : > { %p2040_p2 = pneg %p2039_p1 }
  0x1b   : > { %p2045_p4 = pnand %p2043_p3, %p2040_p2 }
  0x1d   : > { %2048 = shalt.err (!%p2045_p4)
}
  0x1e   : > { %s2049_s16 = scalar_lea.vmem %s182_s7, 4096  ;;  %p2057_p9 = scmp.lt.s32.totalorder %s182_s7, %s182_s7 }
  0x1f   : > { %p2050_p7 = scmp.ne.s32.totalorder %s182_s7, %s2049_s16  ;;  %p2058_p6 = scmp.lt.s32.totalorder %s2049_s16, %s2049_s16 }
  0x21   : > { %p2052_p8 = pnand %p2050_p7, %p2038_p0  ;;  %p2059_p5 = por %p2058_p6, %p2057_p9 }
  0x23   : > { %p2053_p11 = pneg %p2052_p8 }
  0x25   : > { %p2060_p10 = pnand %p2059_p5, %p2053_p11 }
  0x27   : > { %2063 = shalt.err (!%p2060_p10)
}
  0x28   : > { %s2133_s17 = smov 256   ;;  %s2134_s23 = smov 16  }
  0x29   : > { %1908 = dma.hbm_to_vmem [thread:$0]  (!%p2228_p12), %s2946_s4, 4096, %s182_s7, [#allocation3], %s2133_s17, %s2133_s17, %s2134_s23  }
  0x2a   : > { %p2956_p13 = scmp.ne.s32.totalorder %s2954_s30, 0 }
  0x2c   : > { %206 = sbr.rel (%p2956_p13) target bundleno = 985 (0x3d9), region = 40 }
  0x33   : > { %p2957_p1 = scmp.eq.s32.totalorder %s2192_s22, 0 }
  0x35   : > { %2109 = dma.done.wait (%p2957_p1), [#allocation3], 4096   ;;  %p2958_p0 = pmov %p2957_p1 }
  0x36   : > { %s1560_s6 = sshll.u32 %s2192_s22, 3  ;;  %v2135_v0 = vmov 0   ;;  %v1956_v1 = vld [vmem:[%s2943_s1 + $0x4] ss:$12 sps:$4 sm:$0xff]   ;;  %v1958_v2 = vld [vmem:[%s2943_s1] ss:$12 sps:$4 sm:$0xff]   ;;  %v264_v20 = vlaneseq }
  0x37   : > { %2111 = vsyncadd (%p2958_p0), [#allocation3], 4294963200  ;;  %356 = vmatprep.mubr.bf16.mxu0 %v2135_v0  ;;  %p235_p5 = scmp.lt.s32.totalorder %s1560_s6, 15  ;;  %324 = vmatprep.subr.bf16.mxu0 %v1956_v1  ;;  %v1959_v3 = vld [vmem:[%s2943_s1 + $0x1c] ss:$12 sps:$4 sm:$0xff]   ;;  %vm311_vm0 = vcmask 261120  }
  0x38   : > { %325 = vmatpush1.bf16.msra.mxu0 %v1958_v2  ;;  %v1961_v5 = vld [vmem:[%s2943_s1 + $0x18] ss:$12 sps:$4 sm:$0xff]   ;;  %v1962_v8 = vld [vmem:[%s2943_s1 + $0x8] ss:$12 sps:$4 sm:$0xff]   ;;  %v1963_v9 = vld [vmem:[%s2943_s1 + $0x20] ss:$12 sps:$4 sm:$0xff]  }
  0x39   : > { %s2986_s6 = smov (!%p235_p5, %s1560_s6), 15  ;;  %326 = vmatprep.subr.bf16.mxu0 %v1959_v3  ;;  %1727 = vmatprep.subr.bf16.mxu1 %v1962_v8  ;;  %v1964_v19 = vld [vmem:[%s2945_s3] sm:$0xff]   ;;  %v2287_v21 = vshrl.u32 %v264_v20, 7  ;;  %v1965_v43 = vld [vmem:[%s2945_s3 + $0x8] sm:$0xff]   ;;  %v1966_v48 = vld [vmem:[%s2945_s3 + $0x10] sm:$0xff]   ;;  %s2136_s10 = smov 32  }
  0x3a   : > { %s1561_s8 = sshll.u32 %s2986_s6, 3  ;;  %1728 = vmatpush3.bf16.msra.mxu1 %v1962_v8  ;;  %v2293_v23 = vld [vmem:[%s2944_s2] sm:$0x7]  ;;  %v1967_v54 = vld [vmem:[%s2945_s3 + $0x18] sm:$0xff]   ;;  %v1969_v61 = vld [vmem:[%s2945_s3 + $0x28] sm:$0xff]   ;;  %s2138_s11 = smov 96  }
  0x3b   : > { %s238_s7 = scalar_lea.vmem %s2942_s0, %s1561_s8  ;;  %1729 = vmatprep.subr.bf16.mxu1 %v1963_v9  ;;  %v270_v22 = vsub.s32 1, %v2287_v21  ;;  %v1968_v60 = vld [vmem:[%s2945_s3 + $0x20] sm:$0xff]   ;;  %v274_v62 = vsub.s32 2, %v2287_v21  ;;  %v1970_v63 = vld [vmem:[%s2945_s3 + $0x30] sm:$0xff]   ;;  %v1971_v1 = vld [vmem:[%s2945_s3 + $0x38] sm:$0xff]   ;;  %vm755_vm1 = vcmask 523264  }
  0x3c   : > { %v242_v4 = vld [vmem:[%s238_s7] sm:$0xff]  ;;  %v243_v6 = vld [vmem:[%s238_s7 + $0x8] sm:$0xff]  ;;  %327 = vmatpush1.bf16.msra.mxu0 %v1961_v5  ;;  %v244_v10 = vld [vmem:[%s238_s7 + $0x10] sm:$0xff]  ;;  %vm764_vm2 = vcmask 785408   ;;  %s231_s30 = sand.u32 1, %s2122_s19   ;;  %s1637_s15 = sshll.u32 %s2192_s22, 9 }
  0x3d   : > { %v250_v7 = vpack.c.bf16 %v243_v6, %v242_v4  ;;  %v245_v11 = vld [vmem:[%s238_s7 + $0x18] sm:$0xff]  ;;  %v246_v12 = vld [vmem:[%s238_s7 + $0x20] sm:$0xff]  ;;  %v247_v13 = vld [vmem:[%s238_s7 + $0x28] sm:$0xff]  ;;  %1739 = vmatprep.subr.bf16.mxu0 %v1964_v19  ;;  %v271_v24 = vrot.slane %v2293_v23, %v270_v22  ;;  %s1559_s12 = sshll.u32 %s231_s30, 5  ;;  %s2895_s23 = scalar_lea.hbm %s2947_s5, %s1637_s15 }
  0x3e   : > { %1730 = vmatpush3.bf16.msra.mxu1 %v1963_v9  ;;  %v251_v14 = vpack.c.bf16 %v245_v11, %v244_v10  ;;  %v252_v15 = vpack.c.bf16 %v247_v13, %v246_v12  ;;  %v248_v16 = vld [vmem:[%s238_s7 + $0x30] sm:$0xff]  ;;  %v249_v17 = vld [vmem:[%s238_s7 + $0x38] sm:$0xff]  ;;  %s2137_s7 = smov 64   ;;  %s233_s13 = scalar_lea.vmem [#allocation5], %s1559_s12 }
  0x3f   : > { %1731 = vmatprep.mubr.msk.bf16.mxu1 %vm311_vm0, %v250_v7  ;;  %1568 = vmatmul.mubr.msk.bf16.vlgmr.msra.gmra.mrb[0].mxu0 %vm311_vm0, %v250_v7  ;;  %v253_v18 = vpack.c.bf16 %v249_v17, %v248_v16  ;;  %v1972_v10 = vld [vmem:[#allocation2 + $0x4] ss:$16 sps:$4 sm:$0xff]   ;;  %v1973_v11 = vld [vmem:[#allocation2] ss:$16 sps:$4 sm:$0xff]   ;;  %s1479_s14 = sshll.u32 %s233_s13, 4  ;;  %s2899_s25 = scalar_lea.sflag [#allocation4], %s231_s30  ;;  %s2890_s14 = int_to_ptr.vmem [resolvable:$true] %s1479_s14 }
  0x40   : > { %366 = vmatprep.mubr.bf16.mxu0 %v2135_v0  ;;  %1740 = vmatpush3.bf16.msra.mxu0 %v1964_v19  ;;  %v1975_v12 = vld [vmem:[#allocation2 + $0x20] ss:$16 sps:$4 sm:$0xff]   ;;  %s2064_s26 = scalar_lea.vmem %s2890_s14, 512  ;;  %p2979_p9 = scmp.ne.s32.totalorder %s2952_s28, 0 }
  0x41   : > { %1732 = vmatmul.mubr.msk.bf16.vlgmr.msra.gmra.mrb[0].mxu1 %vm311_vm0, %v251_v14  ;;  %1741 = vmatprep.subr.bf16.mxu0 %v1965_v43  ;;  %p2065_p6 = scmp.ne.s32.totalorder %s2890_s14, %s2064_s26  ;;  %s2139_s22 = smov [#allocation5]  }
  0x42   : > { %1735 = vmatprep.mubr.msk.bf16.mxu1 %vm311_vm0, %v252_v15  ;;  %1787 = vmatprep.subr.bf16.mxu1 %v1973_v11  ;;  %s2068_s6 = sshll.u32 %s2139_s22, 4  ;;  %s2069_s6 = int_to_ptr.vmem [resolvable:$false] %s2068_s6 }
  0x43   : > { %1788 = vmatpush3.bf16.msra.mxu1 %v1973_v11  ;;  %p2066_p10 = pnand %p2065_p6, %p2979_p9  ;;  %s2070_s8 = scalar_lea.vmem %s2069_s6, 1024 }
  0x44   : > { %1742 = vmatpush3.bf16.msra.mxu0 %v1965_v43  ;;  %1789 = vmatprep.subr.bf16.mxu1 %v1975_v12  ;;  %p2071_p2 = scmp.lt.s32.totalorder %s2890_s14, %s2069_s6  ;;  %p2072_p3 = scmp.lt.s32.totalorder %s2070_s8, %s2064_s26 }
  0x45   : > { %1743 = vmatprep.subr.bf16.mxu0 %v1966_v48  ;;  %p2067_p12 = pneg %p2066_p10 }
  0x46   : > { %p2073_p4 = por %p2072_p3, %p2071_p2 }
  0x47   : > { %1569 = vmatmul.mubr.msk.bf16.gmra.mrb[4].mxu0 %vm311_vm0, %v251_v14  ;;  %1790 = vmatpush3.bf16.msra.mxu1 %v1975_v12 }
  0x48   : > { %376 = vmatprep.mubr.bf16.mxu0 %v2135_v0  ;;  %1744 = vmatpush3.bf16.msra.mxu0 %v1966_v48  ;;  %p2074_p7 = pnand %p2073_p4, %p2067_p12 }
  0x49   : > { %1736 = vmatmul.mubr.msk.bf16.gmra.mrb[4].mxu1 %vm311_vm0, %v253_v18  ;;  %1745 = vmatprep.subr.bf16.mxu0 %v1967_v54 }
  0x4c   : > { %1746 = vmatpush3.bf16.msra.mxu0 %v1967_v54 }
  0x4d   : > { %1747 = vmatprep.subr.bf16.mxu0 %v1968_v60 }
  0x4f   : > { %1570 = vmatmul.mubr.msk.bf16.gmra.mrb[8].mxu0 %vm311_vm0, %v252_v15 }
  0x50   : > { %386 = vmatprep.mubr.bf16.mxu0 %v2135_v0  ;;  %1748 = vmatpush3.bf16.msra.mxu0 %v1968_v60  ;;  %v275_v0 = vrot.slane %v2293_v23, %v274_v62 }
  0x51   : > { %1749 = vmatprep.subr.bf16.mxu0 %v1969_v61 }
  0x54   : > { %1750 = vmatpush3.bf16.msra.mxu0 %v1969_v61 }
  0x55   : > { %1751 = vmatprep.subr.bf16.mxu0 %v1970_v63 }
  0x57   : > { %1571 = vmatmul.mubr.msk.bf16.gmra.mrb[12].mxu0 %vm311_vm0, %v253_v18 }
  0x58   : > { %1752 = vmatpush3.bf16.msra.mxu0 %v1970_v63 }
  0x59   : > { %1753 = vmatprep.subr.bf16.mxu0 %v1971_v1 }
  0x5c   : > { %1754 = vmatpush3.bf16.msra.mxu0 %v1971_v1 }
  0x5d   : > { %1763 = vmatprep.subr.bf16.mxu0 %v1972_v10 }
 0x112   : > { %v2296_v25 = vpop.f32.mrb[0].mxu0 }
 0x113   : > { %v360_v26 = vpop.f32.mrb[1].mxu0 }
 0x114   : > { %v2298_v27 = vadd.f32 %v360_v26, %v271_v24  ;;  %v2300_v28 = vpop.f32.mrb[2].mxu0  ;;  %v1733_v31 = vpop.f32.mrb[0].mxu1 }
 0x115   : > { %v364_v29 = vpop.f32.mrb[3].mxu0  ;;  %v431_v32 = vpop.f32.mrb[1].mxu1  ;;  %v2363_v4 = vadd.f32 %v1733_v31, %v275_v0 }
 0x116   : > { %462 = vmax.xlane.f32.xlu0 %v2298_v27  ;;  %v2303_v30 = vadd.f32 %v364_v29, %v271_v24  ;;  %v1734_v34 = vpop.f32.mrb[2].mxu1  ;;  %v2361_v3 = vadd.f32 %v431_v32, %v275_v0 }
 0x117   : > { %v434_v36 = vpop.f32.mrb[3].mxu1  ;;  %v2367_v5 = vadd.f32 %v1734_v34, %v275_v0 }
 0x118   : > { %v2359_v2 = vadd.f32 %v434_v36, %v275_v0 }
 0x11a   : > { %v2305_v33 = vpop.f32.mrb[4].mxu0  ;;  %464 = vmax.xlane.f32.xlu0 %v2303_v30 }
 0x11b   : > { %v370_v35 = vpop.f32.mrb[5].mxu0 }
 0x11c   : > { %v2308_v37 = vadd.f32 %v370_v35, %v271_v24  ;;  %v2310_v38 = vpop.f32.mrb[6].mxu0  ;;  %v1737_v49 = vpop.f32.mrb[4].mxu1 }
 0x11d   : > { %v374_v39 = vpop.f32.mrb[7].mxu0  ;;  %v447_v51 = vpop.f32.mrb[5].mxu1  ;;  %v2384_v7 = vadd.f32 %v1737_v49, %v275_v0 }
 0x11e   : > { %466 = vmax.xlane.f32.xlu1 %v2308_v37  ;;  %v2313_v40 = vadd.f32 %v374_v39, %v271_v24  ;;  %v1738_v53 = vpop.f32.mrb[6].mxu1  ;;  %v2381_v6 = vadd.f32 %v447_v51, %v275_v0 }
 0x11f   : > { %v450_v57 = vpop.f32.mrb[7].mxu1  ;;  %v2391_v9 = vadd.f32 %v1738_v53, %v275_v0 }
 0x120   : > { %v2388_v8 = vadd.f32 %v450_v57, %v275_v0 }
 0x122   : > { %v2315_v41 = vpop.f32.mrb[8].mxu0  ;;  %468 = vmax.xlane.f32.xlu1 %v2313_v40 }
 0x123   : > { %v380_v42 = vpop.f32.mrb[9].mxu0 }
 0x124   : > { %v2321_v44 = vadd.f32 %v380_v42, %v271_v24  ;;  %v2323_v45 = vpop.f32.mrb[10].mxu0 }
 0x125   : > { %v384_v46 = vpop.f32.mrb[11].mxu0 }
 0x126   : > { %v2325_v47 = vadd.f32 %v384_v46, %v271_v24  ;;  %470 = vmax.xlane.f32.xlu0 %v2321_v44 }
 0x128   : > { %472 = vmax.xlane.f32.xlu1 %v2325_v47 }
 0x12a   : > { %v2332_v50 = vpop.f32.mrb[12].mxu0 }
 0x12b   : > { %v390_v52 = vpop.f32.mrb[13].mxu0 }
 0x12c   : > { %v2337_v55 = vadd.f32 %v390_v52, %v271_v24  ;;  %v2339_v56 = vpop.f32.mrb[14].mxu0  ;;  %v1974_v52 = vld [vmem:[#allocation2 + $0x24] ss:$16 sps:$4 sm:$0xff]  }
 0x12d   : > { %v394_v58 = vpop.f32.mrb[15].mxu0 }
 0x12e   : > { %v2341_v59 = vadd.f32 %v394_v58, %v271_v24  ;;  %474 = vmax.xlane.f32.xlu0 %v2337_v55 }
 0x130   : > { %476 = vmax.xlane.f32.xlu1 %v2341_v59 }
 0x141   : > { %677 = vrot.lane.b32.xlu1 %v2359_v2, %s2136_s10 }
 0x144   : > { %675 = vrot.lane.b32.xlu0 %v2361_v3, %s2136_s10 }
 0x145   : > { %679 = vrot.lane.b32.xlu1 %v2363_v4, %s2136_s10 }
 0x148   : > { %699 = vrot.lane.b32.xlu0 %v2361_v3, %s2137_s7 }
 0x149   : > { %681 = vrot.lane.b32.xlu1 %v2367_v5, %s2136_s10 }
 0x14c   : > { %703 = vrot.lane.b32.xlu0 %v2363_v4, %s2137_s7 }
 0x14d   : > { %701 = vrot.lane.b32.xlu1 %v2359_v2, %s2137_s7 }
 0x150   : > { %723 = vrot.lane.b32.xlu0 %v2361_v3, %s2138_s11 }
 0x151   : > { %705 = vrot.lane.b32.xlu1 %v2367_v5, %s2137_s7 }
 0x154   : > { %727 = vrot.lane.b32.xlu0 %v2363_v4, %s2138_s11 }
 0x155   : > { %725 = vrot.lane.b32.xlu1 %v2359_v2, %s2138_s11 }
 0x158   : > { %683 = vrot.lane.b32.xlu0 %v2381_v6, %s2136_s10 }
 0x159   : > { %729 = vrot.lane.b32.xlu1 %v2367_v5, %s2138_s11 }
 0x15c   : > { %687 = vrot.lane.b32.xlu0 %v2384_v7, %s2136_s10 }
 0x15d   : > { %685 = vrot.lane.b32.xlu1 %v2388_v8, %s2136_s10 }
 0x160   : > { %707 = vrot.lane.b32.xlu0 %v2381_v6, %s2137_s7 }
 0x161   : > { %689 = vrot.lane.b32.xlu1 %v2391_v9, %s2136_s10 }
 0x164   : > { %711 = vrot.lane.b32.xlu0 %v2384_v7, %s2137_s7 }
 0x165   : > { %709 = vrot.lane.b32.xlu1 %v2388_v8, %s2137_s7 }
 0x168   : > { %731 = vrot.lane.b32.xlu0 %v2381_v6, %s2138_s11 }
 0x169   : > { %713 = vrot.lane.b32.xlu1 %v2391_v9, %s2137_s7 }
 0x16c   : > { %735 = vrot.lane.b32.xlu0 %v2384_v7, %s2138_s11 }
 0x16d   : > { %733 = vrot.lane.b32.xlu1 %v2388_v8, %s2138_s11 }
 0x171   : > { %737 = vrot.lane.b32.xlu1 %v2391_v9, %s2138_s11 }
 0x1a3   : > { %v463_v13 = vpop.xlane.xlu0 %462 }
 0x1a4   : > { %v478_v14 = vsub.f32 %v2298_v27, %v463_v13 }
 0x1a6   : > { %v486_v15 = vmul.f32 1.442695, %v478_v14 }
 0x1a7   : > { %v465_v16 = vpop.xlane.xlu0 %464 }
 0x1a8   : > { %v479_v17 = vsub.f32 %v2303_v30, %v465_v16  ;;  %2004 = vpow2.f32 %v486_v15 }
 0x1aa   : > { %v488_v18 = vmul.f32 1.442695, %v479_v17 }
 0x1ab   : > { %v467_v19 = vpop.xlane.xlu1 %466 }
 0x1ac   : > { %2006 = vpow2.f32 %v488_v18  ;;  %v480_v20 = vsub.f32 %v2308_v37, %v467_v19 }
 0x1ae   : > { %v490_v22 = vmul.f32 1.442695, %v480_v20 }
 0x1af   : > { %v469_v24 = vpop.xlane.xlu1 %468 }
 0x1b0   : > { %v481_v26 = vsub.f32 %v2313_v40, %v469_v24  ;;  %2008 = vpow2.f32 %v490_v22 }
 0x1b2   : > { %v492_v29 = vmul.f32 1.442695, %v481_v26  ;;  %v2412_v32 = vpop.eup %2004 }
 0x1b3   : > { %v471_v31 = vpop.xlane.xlu0 %470 }
 0x1b4   : > { %2010 = vpow2.f32 %v492_v29  ;;  %v482_v27 = vsub.f32 %v2321_v44, %v471_v31 }
 0x1b5   : > { %v473_v34 = vpop.xlane.xlu1 %472 }
 0x1b6   : > { %v2414_v30 = vpop.eup %2006  ;;  %v494_v35 = vmul.f32 1.442695, %v482_v27  ;;  %v483_v36 = vsub.f32 %v2325_v47, %v473_v34 }
 0x1b7   : > { %v502_v37 = vpack.c.bf16 %v2414_v30, %v2412_v32 }
 0x1b8   : > { %v496_v39 = vmul.f32 1.442695, %v483_v36  ;;  %2012 = vpow2.f32 %v494_v35 }
 0x1b9   : > { %1755 = vmatprep.mubr.bf16.mxu0 %v502_v37 }
 0x1ba   : > { %2014 = vpow2.f32 %v496_v39  ;;  %v2420_v43 = vpop.eup %2008 }
 0x1bb   : > { %v475_v40 = vpop.xlane.xlu0 %474 }
 0x1bc   : > { %v484_v42 = vsub.f32 %v2337_v55, %v475_v40 }
 0x1bd   : > { %v477_v44 = vpop.xlane.xlu1 %476 }
 0x1be   : > { %v2422_v46 = vpop.eup %2010  ;;  %v498_v48 = vmul.f32 1.442695, %v484_v42  ;;  %v485_v49 = vsub.f32 %v2341_v59, %v477_v44  ;;  %v1976_v44 = vld [vmem:[#allocation2 + $0x44] ss:$16 sps:$4 sm:$0xff]  }
 0x1bf   : > { %v503_v47 = vpack.c.bf16 %v2422_v46, %v2420_v43  ;;  %v2427_v51 = vpop.permute.xlu0 %675 }
 0x1c0   : > { %v500_v53 = vmul.f32 1.442695, %v485_v49  ;;  %2016 = vpow2.f32 %v498_v48  ;;  %v1977_v48 = vld [vmem:[#allocation2 + $0x40] ss:$16 sps:$4 sm:$0xff]   ;;  %v1978_v49 = vld [vmem:[#allocation2 + $0x64] ss:$16 sps:$4 sm:$0xff]  }
 0x1c1   : > { %1756 = vmatmul.mubr.bf16.vlgmr.msra.gmra.mrb[16].mxu0 %v503_v47  ;;  %v2429_v54 = vpop.permute.xlu1 %677  ;;  %1791 = vmatprep.subr.bf16.mxu1 %v1977_v48  ;;  %v1979_v47 = vld [vmem:[#allocation2 + $0x60] ss:$16 sps:$4 sm:$0xff]  }
 0x1c2   : > { %2018 = vpow2.f32 %v500_v53  ;;  %1764 = vmatpush3.bf16.msra.mxu0 %v1972_v10  ;;  %v2431_v55 = vpop.eup %2012  ;;  %1792 = vmatpush3.bf16.msra.mxu1 %v1977_v48  ;;  %v1981_v53 = vld [vmem:[#allocation2 + $0x80] ss:$16 sps:$4 sm:$0xff]   ;;  %v2507_v48 = vld [vmem:[#allocation2 + $0xc] ss:$16 sps:$4 sm:$0xff]  }
 0x1c3   : > { %v2433_v57 = vpop.permute.xlu0 %699  ;;  %1765 = vmatprep.subr.bf16.mxu0 %v1974_v52  ;;  %1793 = vmatprep.subr.bf16.mxu1 %v1979_v47 }
 0x1c4   : > { %v2435_v58 = vpop.eup %2014 }
 0x1c5   : > { %2959 = vst [vmem:[#allocation8_spill] sm:$0xff] %v2435_v58  ;;  %v504_v59 = vpack.c.bf16 %v2435_v58, %v2431_v55  ;;  %v2439_v60 = vpop.permute.xlu1 %679 }
 0x1c6   : > { %1766 = vmatpush3.bf16.msra.mxu0 %v1974_v52  ;;  %1794 = vmatpush3.bf16.msra.mxu1 %v1979_v47  ;;  %v1980_v52 = vld [vmem:[#allocation2 + $0x84] ss:$16 sps:$4 sm:$0xff]  }
 0x1c7   : > { %1759 = vmatprep.mubr.bf16.mxu0 %v504_v59  ;;  %v2441_v61 = vpop.permute.xlu0 %703  ;;  %1767 = vmatprep.subr.bf16.mxu0 %v1976_v44  ;;  %v1982_v59 = vld [vmem:[#allocation2 + $0xa4] ss:$16 sps:$4 sm:$0xff]  }
 0x1c8   : > { %1795 = vmatprep.subr.bf16.mxu1 %v1981_v53 }
 0x1c9   : > { %v2443_v62 = vpop.permute.xlu1 %681 }
 0x1ca   : > { %v2445_v63 = vpop.eup %2016  ;;  %1768 = vmatpush3.bf16.msra.mxu0 %v1976_v44  ;;  %1796 = vmatpush3.bf16.msra.mxu1 %v1981_v53  ;;  %v2505_v44 = vld [vmem:[#allocation2 + $0x8] ss:$16 sps:$4 sm:$0xff]  }
 0x1cb   : > { %v2447_v0 = vpop.permute.xlu0 %723  ;;  %1769 = vmatprep.subr.bf16.mxu0 %v1978_v49 }
 0x1cc   : > { %v2449_v1 = vpop.eup %2018 }
 0x1cd   : > { %v505_v10 = vpack.c.bf16 %v2449_v1, %v2445_v63  ;;  %v2453_v11 = vpop.permute.xlu1 %701 }
 0x1ce   : > { %1770 = vmatpush3.bf16.msra.mxu0 %v1978_v49  ;;  %v266_v49 = vsub.s32 0, %v2287_v21 }
 0x1cf   : > { %1760 = vmatmul.mubr.bf16.gmra.mrb[20].mxu0 %v505_v10  ;;  %v2455_v12 = vpop.permute.xlu0 %727  ;;  %1771 = vmatprep.subr.bf16.mxu0 %v1980_v52  ;;  %v1983_v10 = vld [vmem:[#allocation2 + $0xa0] ss:$16 sps:$4 sm:$0xff]  }
 0x1d0   : > { %1797 = vmatprep.subr.bf16.mxu1 %v1983_v10  ;;  %v267_v47 = vrot.slane %v2293_v23, %v266_v49  ;;  %v801_v23 = vsel %vm311_vm0, %v2447_v0, %v2361_v3 }
 0x1d1   : > { %v2457_v13 = vpop.permute.xlu1 %705  ;;  %1798 = vmatpush3.bf16.msra.mxu1 %v1983_v10  ;;  %v1252_v10 = vsel %vm311_vm0, %v2427_v51, %v2433_v57  ;;  %v809_v49 = vsel %vm755_vm1, %v801_v23, %v2427_v51 }
 0x1d2   : > { %1772 = vmatpush3.bf16.msra.mxu0 %v1980_v52  ;;  %v2514_v52 = vadd.f32 %v2296_v25, %v267_v47  ;;  %v2517_v53 = vadd.f32 %v2300_v28, %v267_v47  ;;  %v2529_v21 = vadd.f32 %v2310_v38, %v267_v47  ;;  %v1079_v25 = vsel %vm311_vm0, %v2433_v57, %v2447_v0 }
 0x1d3   : > { %v2459_v14 = vpop.permute.xlu0 %683  ;;  %1773 = vmatprep.subr.bf16.mxu0 %v1982_v59  ;;  %v2538_v28 = vadd.f32 %v2315_v41, %v267_v47  ;;  %v1254_v38 = vsel %vm311_vm0, %v2439_v60, %v2441_v61 }
 0x1d4   : > { %v1262_v23 = vsel %vm755_vm1, %v1254_v38, %v2455_v12 }
 0x1d5   : > { %v2461_v15 = vpop.permute.xlu1 %725  ;;  %2962 = vst [vmem:[#allocation11_spill] sm:$0xff] %v2538_v28  ;;  %v1253_v28 = vsel %vm311_vm0, %v2429_v54, %v2453_v11 }
 0x1d6   : > { %1774 = vmatpush3.bf16.msra.mxu0 %v1982_v59  ;;  %v747_v59 = vsel %vm311_vm0, %v2361_v3, %v2427_v51 }
 0x1d7   : > { %v2463_v16 = vpop.permute.xlu0 %687  ;;  %v756_v41 = vsel %vm755_vm1, %v747_v59, %v2433_v57  ;;  %v750_v59 = vsel %vm311_vm0, %v2367_v5, %v2443_v62 }
 0x1d9   : > { %v2465_v17 = vpop.permute.xlu1 %729 }
 0x1db   : > { %v2467_v18 = vpop.permute.xlu0 %707 }
 0x1dd   : > { %v2469_v19 = vpop.permute.xlu1 %685 }
 0x1df   : > { %v2471_v20 = vpop.permute.xlu0 %711 }
 0x1e0   : > { %v1258_v29 = vsel %vm311_vm0, %v2463_v16, %v2471_v20 }
 0x1e1   : > { %v2473_v22 = vpop.permute.xlu1 %689 }
 0x1e3   : > { %v2475_v24 = vpop.permute.xlu0 %731 }
 0x1e5   : > { %v2477_v26 = vpop.permute.xlu1 %709 }
 0x1e7   : > { %v2482_v31 = vpop.permute.xlu0 %735 }
 0x1e8   : > { %v1266_v27 = vsel %vm755_vm1, %v1258_v29, %v2482_v31  ;;  %v1984_v29 = vld [vmem:[#allocation2 + $0xc4] ss:$16 sps:$4 sm:$0xff]  }
 0x1e9   : > { %v2486_v34 = vpop.permute.xlu1 %713  ;;  %v2490_v35 = vsel %vm764_vm2, %v1266_v27, %v2384_v7  ;;  %v1985_v27 = vld [vmem:[#allocation2 + $0xc0] ss:$16 sps:$4 sm:$0xff]   ;;  %1775 = vmatprep.subr.bf16.mxu0 %v1984_v29 }
 0x1ea   : > { %2960 = vst [vmem:[#allocation9_spill] sm:$0xff] %v2490_v35  ;;  %v1259_v37 = vsel %vm311_vm0, %v2473_v22, %v2486_v34  ;;  %1799 = vmatprep.subr.bf16.mxu1 %v1985_v27  ;;  %1776 = vmatpush3.bf16.msra.mxu0 %v1984_v29  ;;  %v2526_v29 = vadd.f32 %v2305_v33, %v267_v47 }
 0x1eb   : > { %1800 = vmatpush3.bf16.msra.mxu1 %v1985_v27  ;;  %v2541_v27 = vadd.f32 %v2323_v45, %v267_v47  ;;  %v749_v33 = vsel %vm311_vm0, %v2363_v4, %v2439_v60  ;;  %v1260_v45 = vsel %vm755_vm1, %v1252_v10, %v2447_v0  ;;  %v1081_v35 = vsel %vm311_vm0, %v2441_v61, %v2455_v12 }
 0x1ec   : > { %v758_v10 = vsel %vm755_vm1, %v749_v33, %v2441_v61  ;;  %v1089_v38 = vsel %vm755_vm1, %v1081_v35, %v2363_v4 }
 0x1ed   : > { %v2492_v36 = vpop.permute.xlu1 %733  ;;  %2963 = vst [vmem:[#allocation12_spill] sm:$0xff] %v2541_v27  ;;  %v2570_v27 = vadd.f32 %v2339_v56, %v267_v47  ;;  %v2586_v56 = vsel %vm764_vm2, %v756_v41, %v2447_v0  ;;  %v759_v0 = vsel %vm755_vm1, %v750_v59, %v2457_v13  ;;  %v2612_v41 = vsel %vm764_vm2, %v1262_v23, %v2363_v4 }
 0x1ee   : > { %v751_v23 = vsel %vm311_vm0, %v2381_v6, %v2459_v14 }
 0x1ef   : > { %2964 = vst [vmem:[#allocation13_spill] sm:$0xff] %v2570_v27 }
 0x1f1   : > { %v2497_v39 = vpop.permute.xlu1 %737 }
 0x1f2   : > { %v1267_v40 = vsel %vm755_vm1, %v1259_v37, %v2497_v39  ;;  %v1986_v37 = vld [vmem:[#allocation2 + $0xe4] ss:$16 sps:$4 sm:$0xff]  }
 0x1f3   : > { %v2503_v42 = vsel %vm764_vm2, %v1267_v40, %v2391_v9  ;;  %v1987_v40 = vld [vmem:[#allocation2 + $0xe0] ss:$16 sps:$4 sm:$0xff]   ;;  %1777 = vmatprep.subr.bf16.mxu0 %v1986_v37 }
 0x1f4   : > { %2961 = vst [vmem:[#allocation10_spill] sm:$0xff] %v2503_v42  ;;  %1801 = vmatprep.subr.bf16.mxu1 %v1987_v40  ;;  %1778 = vmatpush3.bf16.msra.mxu0 %v1986_v37  ;;  %v2550_v37 = vadd.f32 %v2332_v50, %v267_v47  ;;  %v1087_v42 = vsel %vm755_vm1, %v1079_v25, %v2361_v3 }
 0x1f5   : > { %1802 = vmatpush3.bf16.msra.mxu1 %v1987_v40  ;;  %1835 = vmatprep.subr.bf16.mxu0 %v2507_v48  ;;  %v748_v40 = vsel %vm311_vm0, %v2359_v2, %v2429_v54  ;;  %v803_v50 = vsel %vm311_vm0, %v2455_v12, %v2363_v4  ;;  %v2590_v47 = vsel %vm764_vm2, %v1260_v45, %v2361_v3 }
 0x1f6   : > { %1811 = vmatprep.subr.bf16.mxu1 %v2505_v44  ;;  %v757_v25 = vsel %vm755_vm1, %v748_v40, %v2453_v11  ;;  %v811_v33 = vsel %vm755_vm1, %v803_v50, %v2439_v60  ;;  %v2598_v40 = vsel %vm764_vm2, %v809_v49, %v2433_v57  ;;  %v2602_v58 = vsel %vm764_vm2, %v1087_v42, %v2427_v51 }
 0x1f7   : > { %v2608_v3 = vsel %vm764_vm2, %v758_v10, %v2455_v12  ;;  %v1255_v57 = vsel %vm311_vm0, %v2443_v62, %v2457_v13  ;;  %v802_v51 = vsel %vm311_vm0, %v2461_v15, %v2359_v2  ;;  %v1080_v42 = vsel %vm311_vm0, %v2453_v11, %v2461_v15 }
 0x1f8   : > { %v2625_v4 = vsel %vm764_vm2, %v811_v33, %v2441_v61  ;;  %v1261_v10 = vsel %vm755_vm1, %v1253_v28, %v2461_v15  ;;  %v810_v61 = vsel %vm755_vm1, %v802_v51, %v2429_v54  ;;  %v1088_v33 = vsel %vm755_vm1, %v1080_v42, %v2359_v2 }
 0x1f9   : > { %v2645_v28 = vsel %vm764_vm2, %v757_v25, %v2461_v15  ;;  %v1263_v51 = vsel %vm755_vm1, %v1255_v57, %v2465_v17  ;;  %v805_v42 = vsel %vm311_vm0, %v2475_v24, %v2381_v6  ;;  %v1083_v15 = vsel %vm311_vm0, %v2467_v18, %v2475_v24 }
 0x1fa   : > { %v2663_v25 = vsel %vm764_vm2, %v1261_v10, %v2359_v2  ;;  %v818_v57 = vsel %vm764_vm2, %v810_v61, %v2453_v11  ;;  %v760_v10 = vsel %vm755_vm1, %v751_v23, %v2467_v18  ;;  %v813_v11 = vsel %vm755_vm1, %v805_v42, %v2459_v14 }
 0x1fb   : > { %v1085_v61 = vsel %vm311_vm0, %v2471_v20, %v2482_v31 }
 0x294   : > { %v1757_v27 = vpop.f32.mrb[16].mxu0 }
 0x295   : > { %v637_v35 = vmax.f32 %v1757_v27, 1e-30  ;;  %v604_v45 = vpop.f32.mrb[17].mxu0  ;;  %v2629_v27 = vsel %vm764_vm2, %v1089_v38, %v2439_v60  ;;  %v804_v60 = vsel %vm311_vm0, %v2465_v17, %v2367_v5  ;;  %v1082_v38 = vsel %vm311_vm0, %v2457_v13, %v2465_v17 }
 0x296   : > { %v635_v12 = vmax.f32 %v604_v45, 1e-30  ;;  %v1758_v49 = vpop.f32.mrb[18].mxu0  ;;  %v1090_v2 = vsel %vm755_vm1, %v1082_v38, %v2367_v5  ;;  %v2708_v38 = vsel %vm311_vm0, %v2391_v9, %v2473_v22 }
 0x297   : > { %2020 = vrcp.f32 %v637_v35  ;;  %v638_v50 = vmax.f32 %v1758_v49, 1e-30  ;;  %v607_v59 = vpop.f32.mrb[19].mxu0  ;;  %v1256_v35 = vsel %vm311_vm0, %v2459_v14, %v2467_v18  ;;  %v753_v49 = vsel %vm311_vm0, %v2384_v7, %v2463_v16 }
 0x298   : > { %2022 = vrcp.f32 %v635_v12  ;;  %v636_v45 = vmax.f32 %v607_v59, 1e-30  ;;  %v812_v12 = vsel %vm755_vm1, %v804_v60, %v2443_v62  ;;  %v768_v59 = vsel %vm764_vm2, %v759_v0, %v2465_v17 }
 0x299   : > { %2024 = vrcp.f32 %v638_v50  ;;  %v1096_v50 = vsel %vm764_vm2, %v1088_v33, %v2429_v54  ;;  %v2684_v60 = vsel %vm764_vm2, %v1263_v51, %v2367_v5  ;;  %v752_v54 = vsel %vm311_vm0, %v2388_v8, %v2469_v19 }
 0x29a   : > { %2026 = vrcp.f32 %v636_v45  ;;  %v1264_v45 = vsel %vm755_vm1, %v1256_v35, %v2475_v24  ;;  %v1091_v17 = vsel %vm755_vm1, %v1083_v15, %v2381_v6  ;;  %v820_v0 = vsel %vm764_vm2, %v812_v12, %v2457_v13 }
 0x29b   : > { %v762_v23 = vsel %vm755_vm1, %v753_v49, %v2471_v20  ;;  %v807_v5 = vsel %vm311_vm0, %v2482_v31, %v2384_v7  ;;  %v1098_v33 = vsel %vm764_vm2, %v1090_v2, %v2443_v62  ;;  %v2712_v13 = vsel %vm764_vm2, %v760_v10, %v2475_v24 }
 0x29c   : > { %2965 = vst [vmem:[#allocation14_spill] sm:$0xff] %v2712_v13  ;;  %v2716_v35 = vsel %vm764_vm2, %v1264_v45, %v2381_v6  ;;  %v2720_v42 = vsel %vm755_vm1, %v752_v54, %v2477_v26  ;;  %v2725_v62 = vsel %vm311_vm0, %v2469_v19, %v2477_v26  ;;  %v2729_v15 = vsel %vm764_vm2, %v813_v11, %v2467_v18 }
 0x29d   : > { %2966 = vst [vmem:[#allocation15_spill] sm:$0xff] %v2716_v35  ;;  %2967 = vst [vmem:[#allocation16_spill] sm:$0xff] %v2729_v15  ;;  %v2733_v24 = vsel %vm764_vm2, %v1091_v17, %v2459_v14  ;;  %v2737_v12 = vsel %vm764_vm2, %v762_v23, %v2482_v31  ;;  %v2741_v49 = vsel %vm755_vm1, %v807_v5, %v2463_v16 }
 0x29e   : > { %2968 = vst [vmem:[#allocation17_spill] sm:$0xff] %v2733_v24  ;;  %v2745_v2 = vsel %vm755_vm1, %v1085_v61, %v2384_v7  ;;  %v806_v14 = vsel %vm311_vm0, %v2492_v36, %v2388_v8  ;;  %v1084_v31 = vsel %vm311_vm0, %v2477_v26, %v2492_v36  ;;  %v808_v7 = vsel %vm311_vm0, %v2497_v39, %v2391_v9 }
 0x2a1   : > { %v2021_v51 = vpop.eup %2020 }
 0x2a2   : > { %v2023_v6 = vpop.eup %2022  ;;  %v653_v18 = vmul.f32 %v2021_v51, %v2420_v43  ;;  %v1761_v10 = vpop.f32.mrb[20].mxu0 }
 0x2a3   : > { %v2025_v45 = vpop.eup %2024  ;;  %v651_v54 = vmul.f32 %v2023_v6, %v2412_v32  ;;  %v641_v11 = vmax.f32 %v1761_v10, 1e-30  ;;  %v620_v17 = vpop.f32.mrb[21].mxu0 }
 0x2a4   : > { %v2027_v23 = vpop.eup %2026  ;;  %v661_v43 = vmul.f32 %v653_v18, %v2526_v29  ;;  %v654_v5 = vmul.f32 %v2025_v45, %v2422_v46  ;;  %v639_v61 = vmax.f32 %v620_v17, 1e-30  ;;  %v1762_v51 = vpop.f32.mrb[22].mxu0 }
 0x2a5   : > { %v652_v35 = vmul.f32 %v2027_v23, %v2414_v30  ;;  %2028 = vrcp.f32 %v641_v11  ;;  %v642_v24 = vmax.f32 %v1762_v51, 1e-30  ;;  %v623_v13 = vpop.f32.mrb[23].mxu0  ;;  %v659_v32 = vmul.f32 %v651_v54, %v2514_v52 }
 0x2a6   : > { %v662_v6 = vmul.f32 %v654_v5, %v2529_v21  ;;  %2030 = vrcp.f32 %v639_v61  ;;  %v640_v10 = vmax.f32 %v623_v13, 1e-30  ;;  %v827_v15 = vmul.f32 %v2625_v4, %v661_v43  ;;  %v1992_v5 = vld [vmem:[#allocation2 + $0x48] ss:$16 sps:$4 sm:$0xff]   ;;  %v2828_v61 = vld [vmem:[#allocation2 + $0x4c] ss:$16 sps:$4 sm:$0xff]  }
 0x2a7   : > { %2032 = vrcp.f32 %v642_v24  ;;  %v660_v29 = vmul.f32 %v652_v35, %v2517_v53  ;;  %v825_v46 = vmul.f32 %v2598_v40, %v659_v32  ;;  %v773_v18 = vmul.f32 %v2586_v56, %v659_v32 }
 0x2a8   : > { %2034 = vrcp.f32 %v640_v10  ;;  %v828_v30 = vmul.f32 %v820_v0, %v662_v6  ;;  %v775_v45 = vmul.f32 %v2608_v3, %v661_v43  ;;  %v776_v11 = vmul.f32 %v768_v59, %v662_v6 }
 0x2a9   : > { %v826_v17 = vmul.f32 %v818_v57, %v660_v29  ;;  %v774_v52 = vmul.f32 %v2645_v28, %v660_v29  ;;  %v2770_v21 = vmul.f32 %v2602_v58, %v659_v32  ;;  %v2772_v13 = vmul.f32 %v1096_v50, %v660_v29  ;;  %v1990_v58 = vld [vmem:[#allocation2 + $0x28] ss:$16 sps:$4 sm:$0xff]   ;;  %v2785_v57 = vld [vmem:[#allocation2 + $0x2c] ss:$16 sps:$4 sm:$0xff]  }
 0x2aa   : > { %v834_v4 = vpack.c.bf16 %v828_v30, %v827_v15  ;;  %v782_v24 = vpack.c.bf16 %v776_v11, %v775_v45  ;;  %v2775_v53 = vmul.f32 %v2590_v47, %v659_v32  ;;  %v2778_v56 = vmul.f32 %v2663_v25, %v660_v29  ;;  %v2973_v30 = vld [vmem:[#allocation16_spill] sm:$0xff]  ;;  %v2974_v11 = vld [vmem:[#allocation14_spill] sm:$0xff] }
 0x2ab   : > { %v833_v40 = vpack.c.bf16 %v826_v17, %v825_v46  ;;  %v781_v0 = vpack.c.bf16 %v774_v52, %v773_v18  ;;  %v1111_v3 = vpack.c.bf16 %v2772_v13, %v2770_v21  ;;  %v2783_v28 = vmul.f32 %v2629_v27, %v661_v43  ;;  %v2972_v46 = vld [vmem:[#allocation12_spill] sm:$0xff]  ;;  %v2975_v52 = vld [vmem:[#allocation17_spill] sm:$0xff] }
 0x2ac   : > { %v1284_v50 = vpack.c.bf16 %v2778_v56, %v2775_v53  ;;  %v2789_v59 = vmul.f32 %v1098_v33, %v662_v6  ;;  %v2792_v47 = vmul.f32 %v2612_v41, %v661_v43  ;;  %v2795_v25 = vmul.f32 %v2684_v60, %v662_v6 }
 0x2ad   : > { %v814_v35 = vsel %vm755_vm1, %v806_v14, %v2469_v19  ;;  %v763_v27 = vsel %vm755_vm1, %v2708_v38, %v2486_v34  ;;  %v1086_v15 = vsel %vm311_vm0, %v2486_v34, %v2497_v39  ;;  %1779 = vmatprep.mubr.bf16.mxu0 %v833_v40  ;;  %1803 = vmatprep.mubr.bf16.mxu1 %v781_v0 }
 0x2ae   : > { %v1092_v41 = vsel %vm755_vm1, %v1084_v31, %v2388_v8  ;;  %1780 = vmatmul.mubr.bf16.vlgmr.msra.gmra.mrb[24].mxu0 %v834_v4  ;;  %1804 = vmatmul.mubr.bf16.vlgmr.msra.gmra.mrb[8].mxu1 %v782_v24  ;;  %v1112_v60 = vpack.c.bf16 %v2789_v59, %v2783_v28  ;;  %v1285_v33 = vpack.c.bf16 %v2795_v25, %v2792_v47 }
 0x2af   : > { %v2029_v14 = vpop.eup %2028  ;;  %v816_v38 = vsel %vm755_vm1, %v808_v7, %v2473_v22  ;;  %1812 = vmatpush3.bf16.msra.mxu1 %v2505_v44  ;;  %1836 = vmatpush3.bf16.msra.mxu0 %v2507_v48  ;;  %v823_v31 = vsel %vm764_vm2, %v2741_v49, %v2471_v20  ;;  %v1101_v54 = vsel %vm764_vm2, %v2745_v2, %v2463_v16 }
 0x2b0   : > { %v2031_v23 = vpop.eup %2030  ;;  %v770_v43 = vsel %vm764_vm2, %v2720_v42, %v2492_v36  ;;  %v1094_v7 = vsel %vm755_vm1, %v1086_v15, %v2391_v9  ;;  %v657_v44 = vmul.f32 %v2029_v14, %v2445_v63  ;;  %1813 = vmatprep.subr.bf16.mxu1 %v1990_v58  ;;  %1837 = vmatprep.subr.bf16.mxu0 %v2785_v57 }
 0x2b1   : > { %v2033_v20 = vpop.eup %2032  ;;  %v1265_v16 = vsel %vm755_vm1, %v2725_v62, %v2492_v36  ;;  %v655_v49 = vmul.f32 %v2031_v23, %v2431_v55  ;;  %v822_v42 = vsel %vm764_vm2, %v814_v35, %v2477_v26  ;;  %v1100_v9 = vsel %vm764_vm2, %v1092_v41, %v2469_v19  ;;  %v2969_v36 = vld [vmem:[#allocation8_spill] sm:$0xff]  ;;  %v2970_v55 = vld [vmem:[#allocation11_spill] sm:$0xff] }
 0x2b2   : > { %v2035_v63 = vpop.eup %2034  ;;  %v772_v2 = vsel %vm764_vm2, %v763_v27, %v2497_v39  ;;  %v658_v51 = vmul.f32 %v2033_v20, %v2449_v1  ;;  %v665_v32 = vmul.f32 %v657_v44, %v2550_v37  ;;  %v824_v6 = vsel %vm764_vm2, %v816_v38, %v2486_v34  ;;  %v1994_v39 = vld [vmem:[#allocation2 + $0x68] ss:$16 sps:$4 sm:$0xff]   ;;  %v2850_v1 = vld [vmem:[#allocation2 + $0x6c] ss:$16 sps:$4 sm:$0xff]  }
 0x2b3   : > { %v656_v62 = vmul.f32 %v2035_v63, %v2969_v36  ;;  %1814 = vmatpush3.bf16.msra.mxu1 %v1990_v58  ;;  %1838 = vmatpush3.bf16.msra.mxu0 %v2785_v57  ;;  %v663_v26 = vmul.f32 %v655_v49, %v2970_v55  ;;  %v1102_v19 = vsel %vm764_vm2, %v1094_v7, %v2473_v22  ;;  %v2971_v37 = vld [vmem:[#allocation13_spill] sm:$0xff]  ;;  %v2976_v7 = vld [vmem:[#allocation15_spill] sm:$0xff] }
 0x2b4   : > { %1815 = vmatprep.subr.bf16.mxu1 %v1992_v5  ;;  %1839 = vmatprep.subr.bf16.mxu0 %v2828_v61  ;;  %v666_v10 = vmul.f32 %v658_v51, %v2971_v37  ;;  %v831_v29 = vmul.f32 %v823_v31, %v665_v32  ;;  %v779_v34 = vmul.f32 %v2737_v12, %v665_v32  ;;  %v2977_v20 = vld [vmem:[#allocation9_spill] sm:$0xff] }
 0x2b5   : > { %v664_v18 = vmul.f32 %v656_v62, %v2972_v46  ;;  %v829_v45 = vmul.f32 %v2973_v30, %v663_v26  ;;  %v777_v17 = vmul.f32 %v2974_v11, %v663_v26  ;;  %v1107_v4 = vmul.f32 %v2975_v52, %v663_v26  ;;  %v1998_v51 = vld [vmem:[#allocation2 + $0xa8] ss:$16 sps:$4 sm:$0xff]   ;;  %v2003_v36 = vld [vmem:[#allocation2 + $0xec] ss:$16 sps:$4 sm:$0xff]  }
 0x2b6   : > { %v832_v22 = vmul.f32 %v824_v6, %v666_v10  ;;  %v780_v24 = vmul.f32 %v772_v2, %v666_v10  ;;  %v1109_v40 = vmul.f32 %v1101_v54, %v665_v32  ;;  %v1110_v0 = vmul.f32 %v1102_v19, %v666_v10  ;;  %v1996_v54 = vld [vmem:[#allocation2 + $0x88] ss:$16 sps:$4 sm:$0xff]  }
 0x2b7   : > { %1816 = vmatpush3.bf16.msra.mxu1 %v1992_v5  ;;  %1840 = vmatpush3.bf16.msra.mxu0 %v2828_v61  ;;  %v830_v58 = vmul.f32 %v822_v42, %v664_v18  ;;  %v778_v35 = vmul.f32 %v770_v43, %v664_v18  ;;  %v1108_v27 = vmul.f32 %v1100_v9, %v664_v18  ;;  %v2978_v43 = vld [vmem:[#allocation10_spill] sm:$0xff]  ;;  %v1997_v9 = vld [vmem:[#allocation2 + $0x8c] ss:$16 sps:$4 sm:$0xff]   ;;  %v2002_v6 = vld [vmem:[#allocation2 + $0xe8] ss:$16 sps:$4 sm:$0xff]  }
 0x2b8   : > { %1817 = vmatprep.subr.bf16.mxu1 %v1994_v39  ;;  %1841 = vmatprep.subr.bf16.mxu0 %v2850_v1  ;;  %v836_v12 = vpack.c.bf16 %v832_v22, %v831_v29  ;;  %v784_v15 = vpack.c.bf16 %v780_v24, %v779_v34  ;;  %v1114_v41 = vpack.c.bf16 %v1110_v0, %v1109_v40 }
 0x2b9   : > { %v835_v14 = vpack.c.bf16 %v830_v58, %v829_v45  ;;  %v783_v38 = vpack.c.bf16 %v778_v35, %v777_v17  ;;  %v1113_v31 = vpack.c.bf16 %v1108_v27, %v1107_v4  ;;  %v1273_v23 = vsel %vm764_vm2, %v1265_v16, %v2388_v8  ;;  %v1999_v8 = vld [vmem:[#allocation2 + $0xac] ss:$16 sps:$4 sm:$0xff]   ;;  %v2000_v16 = vld [vmem:[#allocation2 + $0xc8] ss:$16 sps:$4 sm:$0xff]  }
 0x2ba   : > { %v1280_v44 = vmul.f32 %v2976_v7, %v663_v26  ;;  %v1281_v5 = vmul.f32 %v1273_v23, %v664_v18  ;;  %v1282_v49 = vmul.f32 %v2977_v20, %v665_v32  ;;  %v1283_v42 = vmul.f32 %v2978_v43, %v666_v10  ;;  %v2001_v32 = vld [vmem:[#allocation2 + $0xcc] ss:$16 sps:$4 sm:$0xff]  }
 0x2bb   : > { %1818 = vmatpush3.bf16.msra.mxu1 %v1994_v39  ;;  %1842 = vmatpush3.bf16.msra.mxu0 %v2850_v1 }
 0x2bc   : > { %1783 = vmatprep.mubr.bf16.mxu0 %v835_v14  ;;  %1807 = vmatprep.mubr.bf16.mxu1 %v783_v38  ;;  %v1286_v63 = vpack.c.bf16 %v1281_v5, %v1280_v44  ;;  %v1287_v2 = vpack.c.bf16 %v1283_v42, %v1282_v49 }
 0x2bd   : > { %1784 = vmatmul.mubr.bf16.gmra.mrb[28].mxu0 %v836_v12  ;;  %1808 = vmatmul.mubr.bf16.gmra.mrb[12].mxu1 %v784_v15 }
 0x2be   : > { %1819 = vmatprep.subr.bf16.mxu1 %v1996_v54  ;;  %1827 = vmatprep.mubr.bf16.mxu1 %v1111_v3 }
 0x2bf   : > { %1843 = vmatprep.subr.bf16.mxu0 %v1997_v9  ;;  %1851 = vmatprep.mubr.bf16.mxu0 %v1284_v50 }
 0x2c0   : > { %1820 = vmatpush3.bf16.msra.mxu1 %v1996_v54  ;;  %1844 = vmatpush3.bf16.msra.mxu0 %v1997_v9 }
 0x2c1   : > { %1821 = vmatprep.subr.bf16.mxu1 %v1998_v51  ;;  %1845 = vmatprep.subr.bf16.mxu0 %v1999_v8 }
 0x2c4   : > { %1822 = vmatpush3.bf16.msra.mxu1 %v1998_v51  ;;  %1846 = vmatpush3.bf16.msra.mxu0 %v1999_v8 }
 0x2c5   : > { %1823 = vmatprep.subr.bf16.mxu1 %v2000_v16  ;;  %1847 = vmatprep.subr.bf16.mxu0 %v2001_v32 }
 0x2c8   : > { %1824 = vmatpush3.bf16.msra.mxu1 %v2000_v16  ;;  %1848 = vmatpush3.bf16.msra.mxu0 %v2001_v32 }
 0x2c9   : > { %1825 = vmatprep.subr.bf16.mxu1 %v2002_v6  ;;  %1849 = vmatprep.subr.bf16.mxu0 %v2003_v36 }
 0x2cc   : > { %1826 = vmatpush3.bf16.msra.mxu1 %v2002_v6  ;;  %1850 = vmatpush3.bf16.msra.mxu0 %v2003_v36 }
 0x2cd   : > { %1859 = vmatprep.subr.bf16.mxu1 %v2507_v48 }
 0x2cf   : > { %1828 = vmatmul.mubr.bf16.vlgmr.msra.gmra.mrb[8].mxu1 %v1112_v60  ;;  %1852 = vmatmul.mubr.bf16.vlgmr.msra.gmra.mrb[32].mxu0 %v1285_v33 }
 0x2d0   : > { %1831 = vmatprep.mubr.bf16.mxu1 %v1113_v31  ;;  %1867 = vmatpush3.bf16.msra.mxu1 %v2507_v48 }
 0x2d1   : > { %1860 = vmatprep.subr.bf16.mxu1 %v2785_v57 }
 0x2d4   : > { %1868 = vmatpush3.bf16.msra.mxu1 %v2785_v57 }
 0x2d5   : > { %1861 = vmatprep.subr.bf16.mxu1 %v2828_v61 }
 0x2d7   : > { %1832 = vmatmul.mubr.bf16.gmra.mrb[12].mxu1 %v1114_v41 }
 0x2d8   : > { %1869 = vmatpush3.bf16.msra.mxu1 %v2828_v61  ;;  %1855 = vmatprep.mubr.bf16.mxu1 %v1286_v63 }
 0x2d9   : > { %1862 = vmatprep.subr.bf16.mxu1 %v2850_v1 }
 0x2dc   : > { %1870 = vmatpush3.bf16.msra.mxu1 %v2850_v1 }
 0x2dd   : > { %1863 = vmatprep.subr.bf16.mxu1 %v1997_v9 }
 0x2e0   : > { %1871 = vmatpush3.bf16.msra.mxu1 %v1997_v9 }
 0x2e1   : > { %1864 = vmatprep.subr.bf16.mxu1 %v1999_v8 }
 0x2e4   : > { %1872 = vmatpush3.bf16.msra.mxu1 %v1999_v8 }
 0x2e5   : > { %1865 = vmatprep.subr.bf16.mxu1 %v2001_v32 }
 0x2e8   : > { %1873 = vmatpush3.bf16.msra.mxu1 %v2001_v32 }
 0x2e9   : > { %1866 = vmatprep.subr.bf16.mxu1 %v2003_v36 }
 0x2ec   : > { %1874 = vmatpush3.bf16.msra.mxu1 %v2003_v36 }
 0x2ef   : > { %1856 = vmatmul.mubr.bf16.vlgmr.msra.gmra.mrb[12].mxu1 %v1287_v2 }
 0x381   : > { %v1781_v48 = vpop.f32.mrb[24].mxu0 }
 0x382   : > { %v935_v21 = vpop.f32.mrb[25].mxu0 }
 0x383   : > { %v1782_v13 = vpop.f32.mrb[26].mxu0 }
 0x384   : > { %v938_v53 = vpop.f32.mrb[27].mxu0 }
 0x390   : > { %v1785_v56 = vpop.f32.mrb[28].mxu0 }
 0x391   : > { %v951_v3 = vpop.f32.mrb[29].mxu0 }
 0x392   : > { %v1786_v28 = vpop.f32.mrb[30].mxu0 }
 0x393   : > { %v954_v57 = vpop.f32.mrb[31].mxu0 }
 0x3a2   : > { %v1829_v50 = vpop.f32.mrb[8].mxu1  ;;  %v1853_v59 = vpop.f32.mrb[32].mxu0 }
 0x3a3   : > { %v1875_v47 = vadd.f32 %v1829_v50, %v1781_v48  ;;  %v1213_v25 = vpop.f32.mrb[9].mxu1  ;;  %v1386_v60 = vpop.f32.mrb[33].mxu0 }
 0x3a4   : > { %v1877_v33 = vadd.f32 %v1213_v25, %v935_v21  ;;  %v1830_v61 = vpop.f32.mrb[10].mxu1  ;;  %v1854_v62 = vpop.f32.mrb[34].mxu0 }
 0x3a5   : > { %v1876_v55 = vadd.f32 %v1875_v47, %v1853_v59  ;;  %v1879_v26 = vadd.f32 %v1830_v61, %v1782_v13  ;;  %v1216_v19 = vpop.f32.mrb[11].mxu1  ;;  %v1389_v39 = vpop.f32.mrb[35].mxu0 }
 0x3a6   : > { %v1878_v1 = vadd.f32 %v1877_v33, %v1386_v60  ;;  %v1881_v37 = vadd.f32 %v1216_v19, %v938_v53 }
 0x3a7   : > { %v1880_v10 = vadd.f32 %v1879_v26, %v1854_v62 }
 0x3a8   : > { %v1882_v29 = vadd.f32 %v1881_v37, %v1389_v39 }
 0x3a9   : > { %v1646_v34 = vpack.c.bf16 %v1880_v10, %v1876_v55 }
 0x3aa   : > { %v1641_v46 = vpack.c.bf16 %v1882_v29, %v1878_v1 }
 0x3ab   : > { %1658 = vst [vmem:[%s233_s13 + $0x8] sm:$0xff] %v1646_v34  }
 0x3ac   : > { %1642 = vst [vmem:[%s233_s13] sm:$0xff] %v1641_v46  }
 0x3c2   : > { %v1857_v18 = vpop.f32.mrb[12].mxu1 }
 0x3c3   : > { %v1883_v30 = vadd.f32 %v1857_v18, %v1785_v56  ;;  %v1402_v45 = vpop.f32.mrb[13].mxu1 }
 0x3c4   : > { %v1884_v11 = vadd.f32 %v1402_v45, %v951_v3  ;;  %v1858_v17 = vpop.f32.mrb[14].mxu1 }
 0x3c5   : > { %v1885_v52 = vadd.f32 %v1858_v17, %v1786_v28  ;;  %v1405_v4 = vpop.f32.mrb[15].mxu1 }
 0x3c6   : > { %v1886_v22 = vadd.f32 %v1405_v4, %v954_v57 }
 0x3c7   : > { %v1656_v24 = vpack.c.bf16 %v1885_v52, %v1883_v30 }
 0x3c8   : > { %v1651_v40 = vpack.c.bf16 %v1886_v22, %v1884_v11 }
 0x3c9   : > { %1660 = vst [vmem:[%s233_s13 + $0x18] sm:$0xff] %v1656_v24  }
 0x3ca   : > { %1659 = vst [vmem:[%s233_s13 + $0x10] sm:$0xff] %v1651_v40  }
 0x3cb   : > { %2077 = shalt.err (!%p2074_p7)
}
 0x3cc   : > { %s2078_s9 = scalar_lea.hbm %s2895_s23, 512  ;;  %s2082_s30 = scalar_lea.hbm %s2947_s5, 1024 }
 0x3cd   : > { %p2079_p8 = scmp.ne.s32.totalorder %s2895_s23, %s2078_s9  ;;  %p2083_p1 = scmp.lt.u32.totalorder %s2895_s23, %s2947_s5 }
 0x3ce   : > { %p2084_p0 = scmp.lt.u32.totalorder %s2082_s30, %s2078_s9  ;;  %p2086_p6 = scmp.lt.u32.totalorder %s2078_s9, %s2895_s23 }
 0x3cf   : > { %p2080_p11 = pnand %p2079_p8, %p2979_p9 }
 0x3d0   : > { %p2085_p5 = por %p2084_p0, %p2083_p1 }
 0x3d1   : > { %p2081_p13 = pneg %p2080_p11 }
 0x3d2   : > { %p2087_p10 = por %p2086_p6, %p2085_p5 }
 0x3d4   : > { %p2088_p12 = pnand %p2087_p10, %p2081_p13 }
 0x3d6   : > { %2091 = shalt.err (!%p2088_p12)
}
 0x3d7   : > { %s2140_s15 = smov 4  }
 0x3d8   : > { %1903 = dma.vmem_to_hbm [thread:$0]  (%p2979_p9), %s2890_s14, 512, %s2895_s23, %s2899_s25, %s2137_s7, %s2137_s7, %s2140_s15  }
 0x3d9 PF: > { %p1915_p2 = scmp.ge.s32.totalorder %s2130_s21, 2  ;;  %s1494_s16 = sand.u32 1, %s2118_s18  }
 0x3da   : > { %p2980_p3 = scmp.ne.s32.totalorder %s2953_s29, 0  ;;  %s1495_s17 = scalar_lea.sflag [#allocation4], %s1494_s16 }
 0x3dc   : > { %p1910_p4 = pnand %p1915_p2, %p2980_p3 }
 0x3de   : > { %2113 = dma.done.wait (!%p1910_p4), %s1495_s17, 512  }
 0x3df   : > { %2115 = vsyncadd (!%p1910_p4), %s1495_s17, 4294966784  ;;  %p16_p7 = scmp.ge.s32.totalorder %s2196_s24, 4   ;;  %s2981_s18 = smov %s2122_s19 }
 0x3e0   : > { %s2982_s19 = smov %s2126_s20  ;;  %s2983_s20 = smov %s2207_s27 }
 0x3e1   : > { %s2984_s21 = smov %s2196_s24  ;;  %18 = sbr.rel (!%p16_p7) target bundleno = 4 (0x4), region = 80 }
 0x3e8   :  { %1500 = vsyncpa [#allocation3], 1 }
 0x3e9   :  { %1502 = vsyncpa [#allocation3 + $0x1], 1 }
 0x3ea   :  { %1503 = vsyncpa [#allocation4], 1 }
 0x3eb   :  { %1505 = vsyncpa [#allocation4 + $0x1], 1 }

</bundles_post_ra>
